<compile_context>
chip_gen: v7x
topology: tpu7x:2x2x1
jax: 0.10.0
libtpu: 0.0.40
codegen_flags: <defaults>
</compile_context>

<pallas_src>
import functools

import jax
import jax.numpy as jnp
from jax.experimental import pallas as pl
from jax.experimental.pallas import tpu as pltpu

EPS = 1e-6


def _round_up(a: int, b: int) -> int:
    return (a + b - 1) // b * b


def _emb_mod_mlp_kernel(x_ref, c_ref, wk_ref, wv_ref, emb_ref, scale_ref, o_ref,
                        *, true_dim: int, num_embeddings: int):
    # x_ref:     (tm, dim_p)        row tile of input (feature dim zero-padded)
    # c_ref:     (tm, 1)            int32 class ids for this row tile
    # wk_ref:    (dim_p, mlp_p)     full Wk (transposed), padded
    # wv_ref:    (mlp_p, dim_p)     full Wv (transposed), padded
    # emb_ref:   (num_embeddings, mlp_p)  full embedding table (resident)
    # scale_ref: (1, dim_p)         per-output-channel scale of wv
    # o_ref:     (tm, dim_p)        output tile
    x = x_ref[...].astype(jnp.float32)

    # RMSNorm (affine=False).  Padded columns are zero, so sum(x*x) is exact;
    # divide by the TRUE feature dim, not the padded one.
    ss = jnp.sum(x * x, axis=-1, keepdims=True)
    xn = x * jax.lax.rsqrt(ss * (1.0 / float(true_dim)) + EPS)

    # wk: (tm, dim_p) @ (dim_p, mlp_p) -> (tm, mlp_p); keep operands in the
    # weight dtype (bf16 stays bf16 on the MXU), accumulate in f32.
    s = jnp.dot(xn.astype(wk_ref.dtype), wk_ref[...],
                preferred_element_type=jnp.float32)

    # In-kernel embedding gather: exact compare/select accumulate over classes.
    # (num_embeddings is small — MNIST-style class conditioning.)
    cls = c_ref[...]                                   # (tm, 1) int32
    mod = jnp.zeros(s.shape, jnp.float32)
    for k in range(num_embeddings):
        row = emb_ref[k:k + 1, :].astype(jnp.float32)  # (1, mlp_p)
        mod = mod + jnp.where(cls == k, row, 0.0)      # broadcast -> (tm, mlp_p)

    # (1 + embed(c)).type_as(x), then modulate (elementwise math kept in f32).
    gate = (1.0 + mod).astype(x_ref.dtype)
    s = s * gate.astype(jnp.float32)

    # SiLU
    s = s * jax.nn.sigmoid(s)

    # wv: (tm, mlp_p) @ (mlp_p, dim_p) -> (tm, dim_p), then per-channel scale.
    out = jnp.dot(s.astype(wv_ref.dtype), wv_ref[...],
                  preferred_element_type=jnp.float32)
    out = out * scale_ref[...].astype(jnp.float32)

    o_ref[...] = out.astype(o_ref.dtype)


@functools.partial(jax.jit, static_argnames=("tm",))
def embed_modulated_mlp(x, c, wk_t, wv_t, embed_w, scale, *, tm=256):
    """x: (N, dim), c: (N,) int ids, wk_t: (dim, mlp_dim), wv_t: (mlp_dim, dim),
    embed_w: (num_embeddings, mlp_dim), scale: (dim,)."""
    N, dim = x.shape
    mlp_dim = wk_t.shape[1]
    num_embeddings = embed_w.shape[0]

    # Lane-dense padding of feature dims; row padding so the tile divides N.
    dim_p = _round_up(dim, 128)
    mlp_p = _round_up(mlp_dim, 128)
    tm_eff = min(tm, _round_up(N, 8))          # keep tm a multiple of 8 sublanes
    n_pad = _round_up(N, tm_eff)

    x_p = jnp.pad(x, ((0, n_pad - N), (0, dim_p - dim)))
    c_p = jnp.pad(c.astype(jnp.int32), (0, n_pad - N)).reshape(n_pad, 1)
    wk_p = jnp.pad(wk_t, ((0, dim_p - dim), (0, mlp_p - mlp_dim)))
    wv_p = jnp.pad(wv_t, ((0, mlp_p - mlp_dim), (0, dim_p - dim)))
    emb_p = jnp.pad(embed_w, ((0, 0), (0, mlp_p - mlp_dim)))
    sc_p = jnp.pad(scale.astype(jnp.float32), (0, dim_p - dim)).reshape(1, dim_p)

    grid = (n_pad // tm_eff,)

    kernel = functools.partial(_emb_mod_mlp_kernel,
                               true_dim=dim, num_embeddings=num_embeddings)

    itemsize = jnp.dtype(x.dtype).itemsize
    bytes_accessed = (
        2 * n_pad * dim_p * itemsize              # x in, out
        + n_pad * 4                               # class ids
        + (dim_p * mlp_p + mlp_p * dim_p) * itemsize
        + num_embeddings * mlp_p * itemsize
        + dim_p * 4)

    out_p = pl.pallas_call(
        kernel,
        out_shape=jax.ShapeDtypeStruct((n_pad, dim_p), x.dtype),
        grid_spec=pltpu.PrefetchScalarGridSpec(
            num_scalar_prefetch=0,
            grid=grid,
            in_specs=[
                pl.BlockSpec((tm_eff, dim_p), lambda i: (i, 0)),          # x tile
                pl.BlockSpec((tm_eff, 1), lambda i: (i, 0)),              # class ids
                pl.BlockSpec((dim_p, mlp_p), lambda i: (0, 0)),           # Wk^T (full)
                pl.BlockSpec((mlp_p, dim_p), lambda i: (0, 0)),           # Wv^T (full)
                pl.BlockSpec((num_embeddings, mlp_p), lambda i: (0, 0)),  # embed table
                pl.BlockSpec((1, dim_p), lambda i: (0, 0)),               # scale
            ],
            out_specs=pl.BlockSpec((tm_eff, dim_p), lambda i: (i, 0)),
        ),
        compiler_params=pltpu.CompilerParams(
            dimension_semantics=("parallel",),
            vmem_limit_bytes=64 * 1024 * 1024,
        ),
        cost_estimate=pl.CostEstimate(
            flops=4 * n_pad * dim_p * mlp_p,           # two matmuls
            transcendentals=n_pad * mlp_p,             # sigmoid
            bytes_accessed=bytes_accessed,
        ),
    )(x_p, c_p, wk_p, wv_p, emb_p, sc_p)

    return out_p[:N, :dim]


def reference(x, c, wk_t, wv_t, embed_w, scale):
    xf = x.astype(jnp.float32)
    xn = xf * jax.lax.rsqrt(jnp.mean(xf * xf, axis=-1, keepdims=True) + EPS)
    s = xn @ wk_t
    s = s * (1.0 + embed_w[c])
    s = s * jax.nn.sigmoid(s)
    return (s @ wv_t) * scale[None, :]


if __name__ == "__main__":
    # Small shapes consistent with the module: dim=64, mlp_dim=128, 10 classes,
    # 16 "tokens" (e.g. batch*seq flattened).
    N, dim, mlp_dim, num_embeddings = 16, 64, 128, 10

    key = jax.random.PRNGKey(0)
    kx, kc, kwk, kwv, kemb, ksc = jax.random.split(key, 6)

    x = jax.random.normal(kx, (N, dim), dtype=jnp.float32)
    c = jax.random.randint(kc, (N,), 0, num_embeddings, dtype=jnp.int32)

    # FusedLinear weights (no bias). Stored transposed for the kernel.
    wk_t = (jax.random.normal(kwk, (dim, mlp_dim), dtype=jnp.float32)
            / jnp.sqrt(dim))
    wv_t = (jax.random.normal(kwv, (mlp_dim, dim), dtype=jnp.float32)
            / jnp.sqrt(mlp_dim))

    # make_embedding: nn.Embedding weight ~ N(0,1) then *0.5
    embed_w = 0.5 * jax.random.normal(kemb, (num_embeddings, mlp_dim),
                                      dtype=jnp.float32)

    # FusedLinear(scale=True, zero_init=True) initializes scale to zeros;
    # we use a deterministic nonzero scale so the kernel output is non-trivial.
    scale = 0.1 * jax.random.normal(ksc, (dim,), dtype=jnp.float32)

    out = embed_modulated_mlp(x, c, wk_t, wv_t, embed_w, scale)
    out = jax.block_until_ready(out)

    ref = reference(x, c, wk_t, wv_t, embed_w, scale)
    assert out.shape == (N, dim)
    assert jnp.allclose(out, ref, atol=1e-4, rtol=1e-4)

    print("KERNEL_OK")
</pallas_src>

<mosaic_0001>
module attributes {stable_mosaic.version = 11 : i64} {
  func.func @_emb_mod_mlp_kernel(%arg0: i32, %arg1: memref<16x128xf32, #tpu.memory_space<vmem>>, %arg2: memref<16x1xi32, #tpu.memory_space<vmem>>, %arg3: memref<128x128xf32, #tpu.memory_space<vmem>>, %arg4: memref<128x128xf32, #tpu.memory_space<vmem>>, %arg5: memref<10x128xf32, #tpu.memory_space<vmem>>, %arg6: memref<1x128xf32, #tpu.memory_space<vmem>>, %arg7: memref<16x128xf32, #tpu.memory_space<vmem>>) attributes {dimension_semantics = [#tpu.dimension_semantics<parallel>], iteration_bounds = array<i64: 1>, scalar_prefetch = 0 : i64, scratch_operands = 0 : i64, tpu.core_type = #tpu.core_type<tc>, window_params = [{transform_indices = @transform_0, window_bounds = array<i64: 16, 128>}, {transform_indices = @transform_1, window_bounds = array<i64: 16, 1>}, {pipeline_mode = #tpu.pipeline_mode<synchronous>, transform_indices = @transform_2, window_bounds = array<i64: 128, 128>}, {pipeline_mode = #tpu.pipeline_mode<synchronous>, transform_indices = @transform_3, window_bounds = array<i64: 128, 128>}, {pipeline_mode = #tpu.pipeline_mode<synchronous>, transform_indices = @transform_4, window_bounds = array<i64: 10, 128>}, {pipeline_mode = #tpu.pipeline_mode<synchronous>, transform_indices = @transform_5, window_bounds = array<i64: 1, 128>}, {transform_indices = @transform_6, window_bounds = array<i64: 16, 128>}]} {
    %c0 = arith.constant 0 : index
    %c0_0 = arith.constant 0 : index
    %0 = vector.load %arg1[%c0, %c0_0] : memref<16x128xf32, #tpu.memory_space<vmem>>, vector<16x128xf32>
    %1 = arith.mulf %0, %0 : vector<16x128xf32>
    %cst = arith.constant dense<0.000000e+00> : vector<16xf32>
    %2 = vector.multi_reduction <add>, %1, %cst [1] : vector<16x128xf32> to vector<16xf32>
    %3 = vector.shape_cast %2 : vector<16xf32> to vector<16x1xf32>
    %cst_1 = arith.constant 1.562500e-02 : f32
    %4 = vector.broadcast %cst_1 : f32 to vector<16x1xf32>
    %5 = arith.mulf %3, %4 : vector<16x1xf32>
    %cst_2 = arith.constant 9.99999997E-7 : f32
    %6 = vector.broadcast %cst_2 : f32 to vector<16x1xf32>
    %7 = arith.addf %5, %6 : vector<16x1xf32>
    %8 = math.rsqrt %7 : vector<16x1xf32>
    %9 = vector.broadcast %8 : vector<16x1xf32> to vector<16x128xf32>
    %10 = arith.mulf %0, %9 : vector<16x128xf32>
    %c0_3 = arith.constant 0 : index
    %c0_4 = arith.constant 0 : index
    %11 = vector.load %arg3[%c0_3, %c0_4] : memref<128x128xf32, #tpu.memory_space<vmem>>, vector<128x128xf32>
    %cst_5 = arith.constant dense<0.000000e+00> : vector<16x128xf32>
    %12 = tpu.matmul %10, %11, %cst_5 {dimension_numbers = #tpu.dot_dimension_numbers<[1], [0], [0], [1], [0, 0, 1, 1], [], []>} : vector<16x128xf32>, vector<128x128xf32>, vector<16x128xf32> -> vector<16x128xf32>
    %c0_6 = arith.constant 0 : index
    %c0_7 = arith.constant 0 : index
    %13 = vector.load %arg2[%c0_6, %c0_7] : memref<16x1xi32, #tpu.memory_space<vmem>>, vector<16x1xi32>
    %cst_8 = arith.constant 0.000000e+00 : f32
    %14 = vector.broadcast %cst_8 : f32 to vector<16x128xf32>
    %c0_9 = arith.constant 0 : index
    %c0_10 = arith.constant 0 : index
    %15 = vector.load %arg5[%c0_9, %c0_10] : memref<10x128xf32, #tpu.memory_space<vmem>>, vector<1x128xf32>
    %c0_i32 = arith.constant 0 : i32
    %16 = vector.broadcast %c0_i32 : i32 to vector<16x1xi32>
    %17 = arith.cmpi eq, %13, %16 : vector<16x1xi32>
    %cst_11 = arith.constant 0.000000e+00 : f32
    %18 = vector.shape_cast %17 : vector<16x1xi1> to vector<16x1xi1>
    %19 = vector.broadcast %18 : vector<16x1xi1> to vector<16x128xi1>
    %20 = vector.shape_cast %15 : vector<1x128xf32> to vector<1x128xf32>
    %21 = vector.broadcast %20 : vector<1x128xf32> to vector<16x128xf32>
    %22 = vector.broadcast %cst_11 : f32 to vector<16x128xf32>
    %23 = arith.select %19, %21, %22 : vector<16x128xi1>, vector<16x128xf32>
    %24 = arith.addf %14, %23 : vector<16x128xf32>
    %c1 = arith.constant 1 : index
    %c0_12 = arith.constant 0 : index
    %25 = vector.load %arg5[%c1, %c0_12] : memref<10x128xf32, #tpu.memory_space<vmem>>, vector<1x128xf32>
    %c1_i32 = arith.constant 1 : i32
    %26 = vector.broadcast %c1_i32 : i32 to vector<16x1xi32>
    %27 = arith.cmpi eq, %13, %26 : vector<16x1xi32>
    %cst_13 = arith.constant 0.000000e+00 : f32
    %28 = vector.shape_cast %27 : vector<16x1xi1> to vector<16x1xi1>
    %29 = vector.broadcast %28 : vector<16x1xi1> to vector<16x128xi1>
    %30 = vector.shape_cast %25 : vector<1x128xf32> to vector<1x128xf32>
    %31 = vector.broadcast %30 : vector<1x128xf32> to vector<16x128xf32>
    %32 = vector.broadcast %cst_13 : f32 to vector<16x128xf32>
    %33 = arith.select %29, %31, %32 : vector<16x128xi1>, vector<16x128xf32>
    %34 = arith.addf %24, %33 : vector<16x128xf32>
    %c2 = arith.constant 2 : index
    %c0_14 = arith.constant 0 : index
    %35 = vector.load %arg5[%c2, %c0_14] : memref<10x128xf32, #tpu.memory_space<vmem>>, vector<1x128xf32>
    %c2_i32 = arith.constant 2 : i32
    %36 = vector.broadcast %c2_i32 : i32 to vector<16x1xi32>
    %37 = arith.cmpi eq, %13, %36 : vector<16x1xi32>
    %cst_15 = arith.constant 0.000000e+00 : f32
    %38 = vector.shape_cast %37 : vector<16x1xi1> to vector<16x1xi1>
    %39 = vector.broadcast %38 : vector<16x1xi1> to vector<16x128xi1>
    %40 = vector.shape_cast %35 : vector<1x128xf32> to vector<1x128xf32>
    %41 = vector.broadcast %40 : vector<1x128xf32> to vector<16x128xf32>
    %42 = vector.broadcast %cst_15 : f32 to vector<16x128xf32>
    %43 = arith.select %39, %41, %42 : vector<16x128xi1>, vector<16x128xf32>
    %44 = arith.addf %34, %43 : vector<16x128xf32>
    %c3 = arith.constant 3 : index
    %c0_16 = arith.constant 0 : index
    %45 = vector.load %arg5[%c3, %c0_16] : memref<10x128xf32, #tpu.memory_space<vmem>>, vector<1x128xf32>
    %c3_i32 = arith.constant 3 : i32
    %46 = vector.broadcast %c3_i32 : i32 to vector<16x1xi32>
    %47 = arith.cmpi eq, %13, %46 : vector<16x1xi32>
    %cst_17 = arith.constant 0.000000e+00 : f32
    %48 = vector.shape_cast %47 : vector<16x1xi1> to vector<16x1xi1>
    %49 = vector.broadcast %48 : vector<16x1xi1> to vector<16x128xi1>
    %50 = vector.shape_cast %45 : vector<1x128xf32> to vector<1x128xf32>
    %51 = vector.broadcast %50 : vector<1x128xf32> to vector<16x128xf32>
    %52 = vector.broadcast %cst_17 : f32 to vector<16x128xf32>
    %53 = arith.select %49, %51, %52 : vector<16x128xi1>, vector<16x128xf32>
    %54 = arith.addf %44, %53 : vector<16x128xf32>
    %c4 = arith.constant 4 : index
    %c0_18 = arith.constant 0 : index
    %55 = vector.load %arg5[%c4, %c0_18] : memref<10x128xf32, #tpu.memory_space<vmem>>, vector<1x128xf32>
    %c4_i32 = arith.constant 4 : i32
    %56 = vector.broadcast %c4_i32 : i32 to vector<16x1xi32>
    %57 = arith.cmpi eq, %13, %56 : vector<16x1xi32>
    %cst_19 = arith.constant 0.000000e+00 : f32
    %58 = vector.shape_cast %57 : vector<16x1xi1> to vector<16x1xi1>
    %59 = vector.broadcast %58 : vector<16x1xi1> to vector<16x128xi1>
    %60 = vector.shape_cast %55 : vector<1x128xf32> to vector<1x128xf32>
    %61 = vector.broadcast %60 : vector<1x128xf32> to vector<16x128xf32>
    %62 = vector.broadcast %cst_19 : f32 to vector<16x128xf32>
    %63 = arith.select %59, %61, %62 : vector<16x128xi1>, vector<16x128xf32>
    %64 = arith.addf %54, %63 : vector<16x128xf32>
    %c5 = arith.constant 5 : index
    %c0_20 = arith.constant 0 : index
    %65 = vector.load %arg5[%c5, %c0_20] : memref<10x128xf32, #tpu.memory_space<vmem>>, vector<1x128xf32>
    %c5_i32 = arith.constant 5 : i32
    %66 = vector.broadcast %c5_i32 : i32 to vector<16x1xi32>
    %67 = arith.cmpi eq, %13, %66 : vector<16x1xi32>
    %cst_21 = arith.constant 0.000000e+00 : f32
    %68 = vector.shape_cast %67 : vector<16x1xi1> to vector<16x1xi1>
    %69 = vector.broadcast %68 : vector<16x1xi1> to vector<16x128xi1>
    %70 = vector.shape_cast %65 : vector<1x128xf32> to vector<1x128xf32>
    %71 = vector.broadcast %70 : vector<1x128xf32> to vector<16x128xf32>
    %72 = vector.broadcast %cst_21 : f32 to vector<16x128xf32>
    %73 = arith.select %69, %71, %72 : vector<16x128xi1>, vector<16x128xf32>
    %74 = arith.addf %64, %73 : vector<16x128xf32>
    %c6 = arith.constant 6 : index
    %c0_22 = arith.constant 0 : index
    %75 = vector.load %arg5[%c6, %c0_22] : memref<10x128xf32, #tpu.memory_space<vmem>>, vector<1x128xf32>
    %c6_i32 = arith.constant 6 : i32
    %76 = vector.broadcast %c6_i32 : i32 to vector<16x1xi32>
    %77 = arith.cmpi eq, %13, %76 : vector<16x1xi32>
    %cst_23 = arith.constant 0.000000e+00 : f32
    %78 = vector.shape_cast %77 : vector<16x1xi1> to vector<16x1xi1>
    %79 = vector.broadcast %78 : vector<16x1xi1> to vector<16x128xi1>
    %80 = vector.shape_cast %75 : vector<1x128xf32> to vector<1x128xf32>
    %81 = vector.broadcast %80 : vector<1x128xf32> to vector<16x128xf32>
    %82 = vector.broadcast %cst_23 : f32 to vector<16x128xf32>
    %83 = arith.select %79, %81, %82 : vector<16x128xi1>, vector<16x128xf32>
    %84 = arith.addf %74, %83 : vector<16x128xf32>
    %c7 = arith.constant 7 : index
    %c0_24 = arith.constant 0 : index
    %85 = vector.load %arg5[%c7, %c0_24] : memref<10x128xf32, #tpu.memory_space<vmem>>, vector<1x128xf32>
    %c7_i32 = arith.constant 7 : i32
    %86 = vector.broadcast %c7_i32 : i32 to vector<16x1xi32>
    %87 = arith.cmpi eq, %13, %86 : vector<16x1xi32>
    %cst_25 = arith.constant 0.000000e+00 : f32
    %88 = vector.shape_cast %87 : vector<16x1xi1> to vector<16x1xi1>
    %89 = vector.broadcast %88 : vector<16x1xi1> to vector<16x128xi1>
    %90 = vector.shape_cast %85 : vector<1x128xf32> to vector<1x128xf32>
    %91 = vector.broadcast %90 : vector<1x128xf32> to vector<16x128xf32>
    %92 = vector.broadcast %cst_25 : f32 to vector<16x128xf32>
    %93 = arith.select %89, %91, %92 : vector<16x128xi1>, vector<16x128xf32>
    %94 = arith.addf %84, %93 : vector<16x128xf32>
    %c8 = arith.constant 8 : index
    %c0_26 = arith.constant 0 : index
    %95 = vector.load %arg5[%c8, %c0_26] : memref<10x128xf32, #tpu.memory_space<vmem>>, vector<1x128xf32>
    %c8_i32 = arith.constant 8 : i32
    %96 = vector.broadcast %c8_i32 : i32 to vector<16x1xi32>
    %97 = arith.cmpi eq, %13, %96 : vector<16x1xi32>
    %cst_27 = arith.constant 0.000000e+00 : f32
    %98 = vector.shape_cast %97 : vector<16x1xi1> to vector<16x1xi1>
    %99 = vector.broadcast %98 : vector<16x1xi1> to vector<16x128xi1>
    %100 = vector.shape_cast %95 : vector<1x128xf32> to vector<1x128xf32>
    %101 = vector.broadcast %100 : vector<1x128xf32> to vector<16x128xf32>
    %102 = vector.broadcast %cst_27 : f32 to vector<16x128xf32>
    %103 = arith.select %99, %101, %102 : vector<16x128xi1>, vector<16x128xf32>
    %104 = arith.addf %94, %103 : vector<16x128xf32>
    %c9 = arith.constant 9 : index
    %c0_28 = arith.constant 0 : index
    %105 = vector.load %arg5[%c9, %c0_28] : memref<10x128xf32, #tpu.memory_space<vmem>>, vector<1x128xf32>
    %c9_i32 = arith.constant 9 : i32
    %106 = vector.broadcast %c9_i32 : i32 to vector<16x1xi32>
    %107 = arith.cmpi eq, %13, %106 : vector<16x1xi32>
    %cst_29 = arith.constant 0.000000e+00 : f32
    %108 = vector.shape_cast %107 : vector<16x1xi1> to vector<16x1xi1>
    %109 = vector.broadcast %108 : vector<16x1xi1> to vector<16x128xi1>
    %110 = vector.shape_cast %105 : vector<1x128xf32> to vector<1x128xf32>
    %111 = vector.broadcast %110 : vector<1x128xf32> to vector<16x128xf32>
    %112 = vector.broadcast %cst_29 : f32 to vector<16x128xf32>
    %113 = arith.select %109, %111, %112 : vector<16x128xi1>, vector<16x128xf32>
    %114 = arith.addf %104, %113 : vector<16x128xf32>
    %cst_30 = arith.constant 1.000000e+00 : f32
    %115 = vector.broadcast %cst_30 : f32 to vector<16x128xf32>
    %116 = arith.addf %115, %114 : vector<16x128xf32>
    %117 = arith.mulf %12, %116 : vector<16x128xf32>
    %118 = arith.negf %117 : vector<16x128xf32>
    %119 = math.exp %118 : vector<16x128xf32>
    %cst_31 = arith.constant 1.000000e+00 : f32
    %120 = vector.broadcast %cst_31 : f32 to vector<16x128xf32>
    %121 = arith.addf %120, %119 : vector<16x128xf32>
    %122 = arith.divf %120, %121 : vector<16x128xf32>
    %123 = arith.mulf %117, %122 : vector<16x128xf32>
    %c0_32 = arith.constant 0 : index
    %c0_33 = arith.constant 0 : index
    %124 = vector.load %arg4[%c0_32, %c0_33] : memref<128x128xf32, #tpu.memory_space<vmem>>, vector<128x128xf32>
    %cst_34 = arith.constant dense<0.000000e+00> : vector<16x128xf32>
    %125 = tpu.matmul %123, %124, %cst_34 {dimension_numbers = #tpu.dot_dimension_numbers<[1], [0], [0], [1], [0, 0, 1, 1], [], []>} : vector<16x128xf32>, vector<128x128xf32>, vector<16x128xf32> -> vector<16x128xf32>
    %c0_35 = arith.constant 0 : index
    %c0_36 = arith.constant 0 : index
    %126 = vector.load %arg6[%c0_35, %c0_36] : memref<1x128xf32, #tpu.memory_space<vmem>>, vector<1x128xf32>
    %127 = vector.broadcast %126 : vector<1x128xf32> to vector<16x128xf32>
    %128 = arith.mulf %125, %127 : vector<16x128xf32>
    %c0_37 = arith.constant 0 : index
    %c0_38 = arith.constant 0 : index
    %129 = vector.load %arg7[%c0_37, %c0_38] : memref<16x128xf32, #tpu.memory_space<vmem>>, vector<16x128xf32>
    tpu.vector_store %arg7[%c0_37, %c0_38], %128 {strides = array<i32>} : memref<16x128xf32, #tpu.memory_space<vmem>>, vector<16x128xf32>,
    return
  }
  func.func @transform_0(%arg0: i32) -> (i32, i32) {
    %c0_i32 = arith.constant 0 : i32
    %c0_i32_0 = arith.constant 0 : i32
    return %arg0, %c0_i32 : i32, i32
  }
  func.func @transform_1(%arg0: i32) -> (i32, i32) {
    %c0_i32 = arith.constant 0 : i32
    %c0_i32_0 = arith.constant 0 : i32
    return %arg0, %c0_i32 : i32, i32
  }
  func.func @transform_2(%arg0: i32) -> (i32, i32) {
    %c0_i32 = arith.constant 0 : i32
    %c0_i32_0 = arith.constant 0 : i32
    %c0_i32_1 = arith.constant 0 : i32
    return %c0_i32, %c0_i32_0 : i32, i32
  }
  func.func @transform_3(%arg0: i32) -> (i32, i32) {
    %c0_i32 = arith.constant 0 : i32
    %c0_i32_0 = arith.constant 0 : i32
    %c0_i32_1 = arith.constant 0 : i32
    return %c0_i32, %c0_i32_0 : i32, i32
  }
  func.func @transform_4(%arg0: i32) -> (i32, i32) {
    %c0_i32 = arith.constant 0 : i32
    %c0_i32_0 = arith.constant 0 : i32
    %c0_i32_1 = arith.constant 0 : i32
    return %c0_i32, %c0_i32_0 : i32, i32
  }
  func.func @transform_5(%arg0: i32) -> (i32, i32) {
    %c0_i32 = arith.constant 0 : i32
    %c0_i32_0 = arith.constant 0 : i32
    %c0_i32_1 = arith.constant 0 : i32
    return %c0_i32, %c0_i32_0 : i32, i32
  }
  func.func @transform_6(%arg0: i32) -> (i32, i32) {
    %c0_i32 = arith.constant 0 : i32
    %c0_i32_0 = arith.constant 0 : i32
    return %arg0, %c0_i32 : i32, i32
  }
}

</mosaic_0001>

<bundles_post_ra>
// kernel: embed_modulated_mlp.1
= control target key start
LH: loop header
LB: loop body
LE: loop exit
PB: predicated region body
PF: predicated region fallthrough
CT: control target
= control target key end

     0   :  { %11 = vsyncpa [#allocation3], 0  ;;  %s1151_s0 = inlined_call_operand.hbm [shape: f32[16,128], index: 0, kind: input, shape index: {}]   ;;  %s1152_s1 = inlined_call_operand.hbm [shape: s32[16,1], index: 1, kind: input, shape index: {}]   ;;  %s1153_s2 = inlined_call_operand.hbm [shape: f32[128,128], index: 2, kind: input, shape index: {}]   ;;  %s1154_s3 = inlined_call_operand.hbm [shape: f32[128,128], index: 3, kind: input, shape index: {}]   ;;  %s1155_s4 = inlined_call_operand.hbm [shape: f32[10,128], index: 4, kind: input, shape index: {}]   ;;  %s1156_s5 = inlined_call_operand.hbm [shape: f32[1,128], index: 5, kind: input, shape index: {}]   ;;  %s1157_s6 = inlined_call_operand.hbm [shape: f32[16,128], index: 6, kind: output, shape index: {}]  }
   0x1   :  { %12 = vsyncpa [#allocation6], 0 }
   0x2   :  { %13 = vsyncpa [#allocation9], 0 }
   0x3   :  { %14 = vsyncpa [#allocation12], 0 }
   0x4   :  { %15 = vsyncpa [#allocation4], 0  ;;  %s934_s21 = smov [#allocation5]   ;;  %s935_s23 = smov [#allocation8]  }
   0x5   :  { %s33_s22 = sshll.u32 %s934_s21, 4  ;;  %s57_s24 = sshll.u32 %s935_s23, 4  ;;  %s34_s22 = int_to_ptr.vmem [resolvable:$true] %s33_s22  ;;  %s979_s24 = int_to_ptr.vmem [resolvable:$true] %s57_s24 }
   0x6   :  { %s770_s27 = scalar_lea.hbm %s1152_s1, 256 }
   0x7   :  { %p771_p0 = scmp.ne.s32.totalorder %s1152_s1, %s770_s27  ;;  %p774_p1 = scmp.lt.u32.totalorder %s770_s27, %s1152_s1 }
   0x9   :  { %p776_p2 = pnand %p774_p1, %p771_p0 }
   0xb   :  { %779 = shalt.err (!%p776_p2)
}
   0xc   :  { %s780_s8 = scalar_lea.vmem %s34_s22, 256  ;;  %p785_p4 = scmp.lt.s32.totalorder %s34_s22, %s34_s22 }
   0xd   :  { %p781_p3 = scmp.ne.s32.totalorder %s34_s22, %s780_s8  ;;  %p786_p5 = scmp.lt.s32.totalorder %s780_s8, %s780_s8 }
   0xf   :  { %p787_p6 = por %p786_p5, %p785_p4 }
  0x11   :  { %p788_p7 = pnand %p787_p6, %p781_p3 }
  0x13   :  { %791 = shalt.err (!%p788_p7)
}
  0x14   :  { %s936_s9 = smov 128   ;;  %s937_s10 = smov 8  }
  0x15   :  { %39 = dma.hbm_to_vmem [thread:$0]  %s1152_s1, 256, %s34_s22, [#allocation6], %s936_s9, %s936_s9, %s937_s10  }
  0x16   :  { %s792_s15 = scalar_lea.hbm %s1154_s3, 2048 }
  0x17   :  { %p793_p8 = scmp.ne.s32.totalorder %s1154_s3, %s792_s15  ;;  %p796_p9 = scmp.lt.u32.totalorder %s792_s15, %s1154_s3 }
  0x19   :  { %p798_p10 = pnand %p796_p9, %p793_p8 }
  0x1b   :  { %801 = shalt.err (!%p798_p10)
}
  0x1c   :  { %s802_s20 = scalar_lea.vmem %s979_s24, 2048  ;;  %p807_p12 = scmp.lt.s32.totalorder %s979_s24, %s979_s24 }
  0x1d   :  { %p803_p11 = scmp.ne.s32.totalorder %s979_s24, %s802_s20  ;;  %p808_p13 = scmp.lt.s32.totalorder %s802_s20, %s802_s20 }
  0x1f   :  { %p809_p0 = por %p808_p13, %p807_p12 }
  0x21   :  { %p810_p1 = pnand %p809_p0, %p803_p11 }
  0x23   :  { %813 = shalt.err (!%p810_p1)
}
  0x24   :  { %63 = dma.hbm_to_vmem [thread:$0]  %s1154_s3, 2048, %s979_s24, [#allocation9], %s936_s9, %s936_s9, %s937_s10  }
  0x25   :  { %s938_s22 = smov [#allocation2]   ;;  %s939_s25 = smov [#allocation7]  }
  0x26   :  { %s21_s23 = sshll.u32 %s938_s22, 4  ;;  %s45_s26 = sshll.u32 %s939_s25, 4  ;;  %s22_s23 = int_to_ptr.vmem [resolvable:$true] %s21_s23  ;;  %s1016_s26 = int_to_ptr.vmem [resolvable:$true] %s45_s26 }
  0x27   :  { %s814_s29 = scalar_lea.hbm %s1151_s0, 256 }
  0x28   :  { %p815_p2 = scmp.ne.s32.totalorder %s1151_s0, %s814_s29  ;;  %p818_p3 = scmp.lt.u32.totalorder %s814_s29, %s1151_s0 }
  0x2a   :  { %p820_p4 = pnand %p818_p3, %p815_p2 }
  0x2c   :  { %823 = shalt.err (!%p820_p4)
}
  0x2d   :  { %s824_s3 = scalar_lea.vmem %s22_s23, 256  ;;  %p829_p6 = scmp.lt.s32.totalorder %s22_s23, %s22_s23 }
  0x2e   :  { %p825_p5 = scmp.ne.s32.totalorder %s22_s23, %s824_s3  ;;  %p830_p7 = scmp.lt.s32.totalorder %s824_s3, %s824_s3 }
  0x30   :  { %p831_p8 = por %p830_p7, %p829_p6 }
  0x32   :  { %p832_p9 = pnand %p831_p8, %p825_p5 }
  0x34   :  { %835 = shalt.err (!%p832_p9)
}
  0x35   :  { %27 = dma.hbm_to_vmem [thread:$0]  %s1151_s0, 256, %s22_s23, [#allocation3], %s936_s9, %s936_s9, %s937_s10  }
  0x36   :  { %s836_s15 = scalar_lea.hbm %s1153_s2, 2048 }
  0x37   :  { %p837_p10 = scmp.ne.s32.totalorder %s1153_s2, %s836_s15  ;;  %p840_p11 = scmp.lt.u32.totalorder %s836_s15, %s1153_s2 }
  0x39   :  { %p842_p12 = pnand %p840_p11, %p837_p10 }
  0x3b   :  { %845 = shalt.err (!%p842_p12)
}
  0x3c   :  { %s846_s20 = scalar_lea.vmem %s1016_s26, 2048  ;;  %p851_p0 = scmp.lt.s32.totalorder %s1016_s26, %s1016_s26 }
  0x3d   :  { %p847_p13 = scmp.ne.s32.totalorder %s1016_s26, %s846_s20  ;;  %p852_p1 = scmp.lt.s32.totalorder %s846_s20, %s846_s20 }
  0x3f   :  { %p853_p2 = por %p852_p1, %p851_p0 }
  0x41   :  { %p854_p3 = pnand %p853_p2, %p847_p13 }
  0x43   :  { %857 = shalt.err (!%p854_p3)
}
  0x44   :  { %51 = dma.hbm_to_vmem [thread:$0]  %s1153_s2, 2048, %s1016_s26, [#allocation6], %s936_s9, %s936_s9, %s937_s10  }
  0x45   :  { %s940_s21 = smov [#allocation10]   ;;  %s941_s23 = smov [#allocation11]  }
  0x46   :  { %s69_s22 = sshll.u32 %s940_s21, 4  ;;  %s82_s25 = sshll.u32 %s941_s23, 4  ;;  %s70_s22 = int_to_ptr.vmem [resolvable:$true] %s69_s22  ;;  %s83_s25 = int_to_ptr.vmem [resolvable:$true] %s82_s25 }
  0x47   :  { %s858_s29 = scalar_lea.hbm %s1155_s4, 256 }
  0x48   :  { %p859_p4 = scmp.ne.s32.totalorder %s1155_s4, %s858_s29  ;;  %p862_p5 = scmp.lt.u32.totalorder %s858_s29, %s1155_s4 }
  0x4a   :  { %p864_p6 = pnand %p862_p5, %p859_p4 }
  0x4c   :  { %867 = shalt.err (!%p864_p6)
}
  0x4d   :  { %s868_s2 = scalar_lea.vmem %s70_s22, 256  ;;  %p873_p8 = scmp.lt.s32.totalorder %s70_s22, %s70_s22 }
  0x4e   :  { %p869_p7 = scmp.ne.s32.totalorder %s70_s22, %s868_s2  ;;  %p874_p9 = scmp.lt.s32.totalorder %s868_s2, %s868_s2 }
  0x50   :  { %p875_p10 = por %p874_p9, %p873_p8 }
  0x52   :  { %p876_p11 = pnand %p875_p10, %p869_p7 }
  0x54   :  { %879 = shalt.err (!%p876_p11)
}
  0x55   :  { %75 = dma.hbm_to_vmem [thread:$0]  %s1155_s4, 256, %s70_s22, [#allocation9], %s936_s9, %s936_s9, %s937_s10  }
  0x56   :  { %s880_s13 = scalar_lea.hbm %s1156_s5, 16 }
  0x57   :  { %p881_p12 = scmp.ne.s32.totalorder %s1156_s5, %s880_s13  ;;  %p884_p13 = scmp.lt.u32.totalorder %s880_s13, %s1156_s5 }
  0x59   :  { %p886_p0 = pnand %p884_p13, %p881_p12 }
  0x5b   :  { %889 = shalt.err (!%p886_p0)
}
  0x5c   :  { %s890_s18 = scalar_lea.vmem %s83_s25, 16  ;;  %s894_s19 = scalar_lea.vmem %s83_s25, 32 }
  0x5d   :  { %p891_p1 = scmp.ne.s32.totalorder %s83_s25, %s890_s18  ;;  %p895_p2 = scmp.lt.s32.totalorder %s83_s25, %s83_s25 }
  0x5e   :  { %p896_p3 = scmp.lt.s32.totalorder %s894_s19, %s890_s18 }
  0x60   :  { %p897_p4 = por %p896_p3, %p895_p2 }
  0x62   :  { %p898_p5 = pnand %p897_p4, %p891_p1 }
  0x64   :  { %901 = shalt.err (!%p898_p5)
}
  0x65   :  { %85 = dma.hbm_to_vmem [thread:$0]  %s1156_s5, 16, %s83_s25, [#allocation12]  }
  0x66   :  { %924 = dma.done.wait [#allocation3], 256  }
  0x67   :  { %925 = vsyncadd [#allocation3], 4294967040 }
  0x68   :  { %926 = dma.done.wait [#allocation6], 2304  }
  0x69   :  { %927 = vsyncadd [#allocation6], 4294964992 }
  0x6a   :  { %928 = dma.done.wait [#allocation9], 2304  }
  0x6b   :  { %929 = vsyncadd [#allocation9], 4294964992 }
  0x6c   :  { %930 = dma.done.wait [#allocation12], 16  }
  0x6d   :  { %931 = vsyncadd [#allocation12], 4294967280  ;;  %v942_v0 = vmov 0   ;;  %v1082_v1 = vld [vmem:[#allocation2] sm:$0xff]  ;;  %v1084_v2 = vld [vmem:[#allocation2 + $0x8] sm:$0xff]  ;;  %s943_s5 = smov [#allocation13]  }
  0x6e   :  { %756 = vset.pattern.permute.xlu1 %v942_v0  ;;  %757 = vset.pattern.permute.xlu0 %v942_v0  ;;  %v1086_v3 = vld [vmem:[#allocation5] sm:$0xff]  ;;  %v106_v4 = vmul.f32 %v1082_v1, %v1082_v1  ;;  %v120_v5 = vld [vmem:[#allocation7] sm:$0xff]  ;;  %v121_v6 = vld [vmem:[#allocation7 + $0x8] sm:$0xff]  ;;  %v107_v12 = vmul.f32 %v1084_v2, %v1084_v2  ;;  %s548_s0 = sshll.u32 %s943_s5, 4  ;;  %s549_s0 = int_to_ptr.vmem [resolvable:$true] %s548_s0 }
  0x6f   :  { %vm214_vm0 = vcmp.eq.s32.totalorder %v1086_v3, 0  ;;  %vm235_vm1 = vcmp.eq.s32.totalorder %v1086_v3, 1  ;;  %v1093_v8 = vld [vmem:[#allocation5 + $0x8] sm:$0xff]  ;;  %v682_v9 = vpack.c.bf16 %v121_v6, %v120_v5  ;;  %v122_v10 = vld [vmem:[#allocation7 + $0x10] sm:$0xff]  ;;  %v124_v14 = vld [vmem:[#allocation7 + $0x20] sm:$0xff]  ;;  %vm256_vm3 = vcmp.eq.s32.totalorder %v1086_v3, 2  ;;  %p907_p7 = scmp.lt.s32.totalorder %s549_s0, %s549_s0 }
  0x70   :  { %v216_v7 = vsel %vm214_vm0, 1, %v942_v0  ;;  %v123_v11 = vld [vmem:[#allocation7 + $0x18] sm:$0xff]  ;;  %108 = vadd.xlane.f32.xlu0 %v106_v4  ;;  %v125_v15 = vld [vmem:[#allocation7 + $0x28] sm:$0xff]  ;;  %v237_v16 = vsel %vm235_vm1, 1, %v942_v0  ;;  %vm236_vm2 = vcmp.eq.s32.totalorder %v1093_v8, 1  ;;  %v258_v19 = vsel %vm256_vm3, 1, %v942_v0 }
  0x71   :  { %219 = vperm.xlu1 %756, %v216_v7   ;;  %v686_v13 = vpack.c.bf16 %v123_v11, %v122_v10  ;;  %683 = vmatprep.subr.bf16.mxu0 %v682_v9  ;;  %v690_v17 = vpack.c.bf16 %v125_v15, %v124_v14  ;;  %v238_v18 = vsel %vm236_vm2, 1, %v942_v0  ;;  %vm257_vm4 = vcmp.eq.s32.totalorder %v1093_v8, 2  ;;  %v126_v20 = vld [vmem:[#allocation7 + $0x30] sm:$0xff]  ;;  %v127_v21 = vld [vmem:[#allocation7 + $0x38] sm:$0xff]  ;;  %v128_v24 = vld [vmem:[#allocation7 + $0x40] sm:$0xff]  ;;  %s902_s1 = scalar_lea.vmem %s549_s0, 256 }
  0x72   :  { %685 = vmatpush3.bf16.msra.mxu0 %v682_v9  ;;  %v259_v22 = vsel %vm257_vm4, 1, %v942_v0  ;;  %v694_v23 = vpack.c.bf16 %v127_v21, %v126_v20  ;;  %vm277_vm5 = vcmp.eq.s32.totalorder %v1086_v3, 3  ;;  %v129_v25 = vld [vmem:[#allocation7 + $0x48] sm:$0xff]  ;;  %vm278_vm6 = vcmp.eq.s32.totalorder %v1093_v8, 3  ;;  %v130_v28 = vld [vmem:[#allocation7 + $0x50] sm:$0xff]  ;;  %v131_v29 = vld [vmem:[#allocation7 + $0x58] sm:$0xff]  ;;  %p903_p6 = scmp.ne.s32.totalorder %s549_s0, %s902_s1  ;;  %p908_p8 = scmp.lt.s32.totalorder %s902_s1, %s902_s1 }
  0x73   :  { %687 = vmatprep.subr.bf16.mxu0 %v686_v13  ;;  %v279_v26 = vsel %vm277_vm5, 1, %v942_v0  ;;  %v698_v27 = vpack.c.bf16 %v129_v25, %v128_v24  ;;  %v280_v30 = vsel %vm278_vm6, 1, %v942_v0  ;;  %v702_v31 = vpack.c.bf16 %v131_v29, %v130_v28  ;;  %v132_v32 = vld [vmem:[#allocation7 + $0x60] sm:$0xff]  ;;  %v133_v33 = vld [vmem:[#allocation7 + $0x68] sm:$0xff]  ;;  %v134_v34 = vld [vmem:[#allocation7 + $0x70] sm:$0xff] }
  0x74   :  { %110 = vadd.xlane.f32.xlu0 %v107_v12  ;;  %vm298_vm7 = vcmp.eq.s32.totalorder %v1086_v3, 4  ;;  %v706_v35 = vpack.c.bf16 %v133_v33, %v132_v32  ;;  %v135_v36 = vld [vmem:[#allocation7 + $0x78] sm:$0xff]  ;;  %vm299_vm8 = vcmp.eq.s32.totalorder %v1093_v8, 4  ;;  %vm319_vm9 = vcmp.eq.s32.totalorder %v1086_v3, 5  ;;  %v441_v61 = vld [vmem:[#allocation8] sm:$0xff]  ;;  %v442_v62 = vld [vmem:[#allocation8 + $0x8] sm:$0xff]  ;;  %p909_p9 = por %p908_p8, %p907_p7 }
  0x75   :  { %240 = vperm.xlu1 %756, %v237_v16   ;;  %v300_v37 = vsel %vm298_vm7, 1, %v942_v0  ;;  %v710_v38 = vpack.c.bf16 %v135_v36, %v134_v34  ;;  %v301_v39 = vsel %vm299_vm8, 1, %v942_v0  ;;  %v321_v40 = vsel %vm319_vm9, 1, %v942_v0  ;;  %v445_v5 = vld [vmem:[#allocation8 + $0x20] sm:$0xff]  ;;  %v446_v6 = vld [vmem:[#allocation8 + $0x28] sm:$0xff]  ;;  %v451_v12 = vld [vmem:[#allocation8 + $0x50] sm:$0xff] }
  0x76   :  { %689 = vmatpush3.bf16.msra.mxu0 %v686_v13  ;;  %vm320_vm10 = vcmp.eq.s32.totalorder %v1093_v8, 5  ;;  %vm215_vm11 = vcmp.eq.s32.totalorder %v1093_v8, 0  ;;  %vm361_vm12 = vcmp.eq.s32.totalorder %v1086_v3, 7  ;;  %vm340_vm13 = vcmp.eq.s32.totalorder %v1086_v3, 6  ;;  %v450_v10 = vld [vmem:[#allocation8 + $0x48] sm:$0xff]  ;;  %v452_v13 = vld [vmem:[#allocation8 + $0x58] sm:$0xff]  ;;  %p910_p10 = pnand %p909_p9, %p903_p6 }
  0x77   :  { %691 = vmatprep.subr.bf16.mxu0 %v690_v17  ;;  %v217_v41 = vsel %vm215_vm11, 1, %v942_v0  ;;  %v322_v42 = vsel %vm320_vm10, 1, %v942_v0  ;;  %v363_v43 = vsel %vm361_vm12, 1, %v942_v0  ;;  %vm382_vm14 = vcmp.eq.s32.totalorder %v1086_v3, 8  ;;  %v453_v15 = vld [vmem:[#allocation8 + $0x60] sm:$0xff]  ;;  %v454_v16 = vld [vmem:[#allocation8 + $0x68] sm:$0xff] }
  0x78   :  { %v342_v44 = vsel %vm340_vm13, 1, %v942_v0  ;;  %vm341_vm15 = vcmp.eq.s32.totalorder %v1093_v8, 6  ;;  %v384_v45 = vsel %vm382_vm14, 1, %v942_v0  ;;  %vm403_vm0 = vcmp.eq.s32.totalorder %v1086_v3, 9  ;;  %v444_v3 = vld [vmem:[#allocation8 + $0x18] sm:$0xff] }
  0x79   :  { %243 = vperm.xlu1 %756, %v238_v18   ;;  %v343_v46 = vsel %vm341_vm15, 1, %v942_v0  ;;  %vm362_vm1 = vcmp.eq.s32.totalorder %v1093_v8, 7  ;;  %v405_v47 = vsel %vm403_vm0, 1, %v942_v0  ;;  %vm383_vm2 = vcmp.eq.s32.totalorder %v1093_v8, 8  ;;  %v456_v20 = vld [vmem:[#allocation8 + $0x78] sm:$0xff] }
  0x7a   :  { %693 = vmatpush3.bf16.msra.mxu0 %v690_v17  ;;  %v364_v48 = vsel %vm362_vm1, 1, %v942_v0  ;;  %v385_v49 = vsel %vm383_vm2, 1, %v942_v0  ;;  %vm404_vm3 = vcmp.eq.s32.totalorder %v1093_v8, 9  ;;  %v714_v63 = vpack.c.bf16 %v442_v62, %v441_v61  ;;  %v448_v8 = vld [vmem:[#allocation8 + $0x38] sm:$0xff]  ;;  %v563_v33 = vld [vmem:[#allocation10] ss:$0 sm:$0xff] }
  0x7b   :  { %695 = vmatprep.subr.bf16.mxu0 %v694_v23  ;;  %v406_v50 = vsel %vm404_vm3, 1, %v942_v0  ;;  %v443_v0 = vld [vmem:[#allocation8 + $0x10] sm:$0xff]  ;;  %v722_v7 = vpack.c.bf16 %v446_v6, %v445_v5  ;;  %v734_v14 = vpack.c.bf16 %v452_v13, %v451_v12  ;;  %v738_v17 = vpack.c.bf16 %v454_v16, %v453_v15  ;;  %v564_v34 = vld [vmem:[#allocation10 + $0x1] ss:$0 sm:$0xff] }
  0x7c   :  { %715 = vmatprep.subr.bf16.mxu1 %v714_v63  ;;  %v718_v4 = vpack.c.bf16 %v444_v3, %v443_v0 }
  0x7d   :  { %261 = vperm.xlu1 %756, %v258_v19   ;;  %717 = vmatpush3.bf16.msra.mxu1 %v714_v63  ;;  %v455_v19 = vld [vmem:[#allocation8 + $0x70] sm:$0xff]  ;;  %v569_v63 = vld [vmem:[#allocation10 + $0x6] ss:$0 sm:$0xff] }
  0x7e   :  { %697 = vmatpush3.bf16.msra.mxu0 %v694_v23  ;;  %719 = vmatprep.subr.bf16.mxu1 %v718_v4  ;;  %v742_v21 = vpack.c.bf16 %v456_v20, %v455_v19 }
  0x7f   :  { %699 = vmatprep.subr.bf16.mxu0 %v698_v27 }
  0x81   :  { %264 = vperm.xlu1 %756, %v259_v22   ;;  %721 = vmatpush3.bf16.msra.mxu1 %v718_v4 }
  0x82   :  { %701 = vmatpush3.bf16.msra.mxu0 %v698_v27  ;;  %723 = vmatprep.subr.bf16.mxu1 %v722_v7 }
  0x83   :  { %703 = vmatprep.subr.bf16.mxu0 %v702_v31 }
  0x85   :  { %282 = vperm.xlu1 %756, %v279_v26   ;;  %725 = vmatpush3.bf16.msra.mxu1 %v722_v7  ;;  %v570_v7 = vld [vmem:[#allocation10 + $0x7] ss:$0 sm:$0xff] }
  0x86   :  { %705 = vmatpush3.bf16.msra.mxu0 %v702_v31 }
  0x87   :  { %707 = vmatprep.subr.bf16.mxu0 %v706_v35 }
  0x89   :  { %285 = vperm.xlu1 %756, %v280_v30  }
  0x8a   :  { %709 = vmatpush3.bf16.msra.mxu0 %v706_v35  ;;  %222 = vperm.xlu0 %757, %v217_v41  }
  0x8b   :  { %711 = vmatprep.subr.bf16.mxu0 %v710_v38 }
  0x8d   :  { %303 = vperm.xlu1 %756, %v300_v37  }
  0x8e   :  { %713 = vmatpush3.bf16.msra.mxu0 %v710_v38  ;;  %366 = vperm.xlu0 %757, %v363_v43  }
  0x91   :  { %306 = vperm.xlu1 %756, %v301_v39   ;;  %v565_v39 = vld [vmem:[#allocation10 + $0x2] ss:$0 sm:$0xff] }
  0x92   :  { %387 = vperm.xlu0 %757, %v384_v45   ;;  %v566_v45 = vld [vmem:[#allocation10 + $0x3] ss:$0 sm:$0xff] }
  0x95   :  { %324 = vperm.xlu1 %756, %v321_v40  }
  0x96   :  { %408 = vperm.xlu0 %757, %v405_v47  }
  0x99   :  { %327 = vperm.xlu1 %756, %v322_v42  }
  0x9d   :  { %345 = vperm.xlu1 %756, %v342_v44  }
  0xa1   :  { %348 = vperm.xlu1 %756, %v343_v46  }
  0xa5   :  { %369 = vperm.xlu1 %756, %v364_v48  }
  0xa9   :  { %390 = vperm.xlu1 %756, %v385_v49  }
  0xad   :  { %411 = vperm.xlu1 %756, %v406_v50  }
  0xf0   :  { %v220_v18 = vpop.permute.xlu1 %219 }
  0xf1   :  { %vm224_vm6 = vcmp.eq.s32.totalorder %v220_v18, 1 }
  0xf2   :  { %v230_v37 = vsel %vm224_vm6, %v563_v33, 0.0 }
  0xf4   :  { %v241_v22 = vpop.permute.xlu1 %240 }
  0xf5   :  { %vm245_vm7 = vcmp.eq.s32.totalorder %v241_v22, 1 }
  0xf6   :  { %v251_v38 = vsel %vm245_vm7, %v564_v34, 0.0 }
  0xf7   :  { %v253_v42 = vadd.f32 %v251_v38, %v230_v37 }
  0xf8   :  { %v244_v23 = vpop.permute.xlu1 %243 }
  0xf9   :  { %vm246_vm4 = vcmp.eq.s32.totalorder %v244_v23, 1 }
  0xfa   :  { %v252_v35 = vsel %vm246_vm4, %v564_v34, 0.0 }
  0xfc   :  { %v262_v24 = vpop.permute.xlu1 %261 }
  0xfd   :  { %v109_v51 = vpop.xlane.xlu0 %108  ;;  %vm266_vm9 = vcmp.eq.s32.totalorder %v262_v24, 1 }
  0xfe   :  { %v112_v52 = vmul.f32 0.015625, %v109_v51  ;;  %v272_v44 = vsel %vm266_vm9, %v565_v39, 0.0  ;;  %v567_v51 = vld [vmem:[#allocation10 + $0x4] ss:$0 sm:$0xff] }
  0xff   :  { %v274_v47 = vadd.f32 %v272_v44, %v253_v42 }
 0x100   :  { %v114_v53 = vadd.f32 1e-06, %v112_v52  ;;  %v265_v25 = vpop.permute.xlu1 %264 }
 0x101   :  { %v111_v54 = vpop.xlane.xlu0 %110  ;;  %vm267_vm8 = vcmp.eq.s32.totalorder %v265_v25, 1 }
 0x102   :  { %758 = vrsqrt.f32 %v114_v53  ;;  %v113_v55 = vmul.f32 0.015625, %v111_v54  ;;  %v273_v43 = vsel %vm267_vm8, %v565_v39, 0.0 }
 0x104   :  { %v115_v56 = vadd.f32 1e-06, %v113_v55  ;;  %v283_v26 = vpop.permute.xlu1 %282 }
 0x105   :  { %vm287_vm11 = vcmp.eq.s32.totalorder %v283_v26, 1 }
 0x106   :  { %760 = vrsqrt.f32 %v115_v56  ;;  %v293_v50 = vsel %vm287_vm11, %v566_v45, 0.0  ;;  %v568_v56 = vld [vmem:[#allocation10 + $0x5] ss:$0 sm:$0xff] }
 0x107   :  { %v295_v53 = vadd.f32 %v293_v50, %v274_v47 }
 0x108   :  { %v286_v27 = vpop.permute.xlu1 %285 }
 0x109   :  { %v223_v31 = vpop.permute.xlu0 %222  ;;  %vm288_vm10 = vcmp.eq.s32.totalorder %v286_v27, 1 }
 0x10a   :  { %vm225_vm5 = vcmp.eq.s32.totalorder %v223_v31, 1  ;;  %v294_v48 = vsel %vm288_vm10, %v566_v45, 0.0 }
 0x10b   :  { %v231_v36 = vsel %vm225_vm5, %v563_v33, 0.0 }
 0x10c   :  { %v759_v57 = vpop.eup %758  ;;  %v304_v28 = vpop.permute.xlu1 %303  ;;  %v254_v41 = vadd.f32 %v252_v35, %v231_v36 }
 0x10d   :  { %v118_v58 = vmul.f32 %v759_v57, %v1082_v1  ;;  %v447_v1 = vld [vmem:[#allocation8 + $0x30] sm:$0xff]  ;;  %vm308_vm13 = vcmp.eq.s32.totalorder %v304_v28, 1 }
 0x10e   :  { %v726_v9 = vpack.c.bf16 %v448_v8, %v447_v1  ;;  %v275_v46 = vadd.f32 %v273_v43, %v254_v41  ;;  %v314_v55 = vsel %vm308_vm13, %v567_v51, 0.0  ;;  %v575_v41 = vld [vmem:[#allocation11] ss:$0 sm:$0xff] }
 0x10f   :  { %644 = vmatprep.mubr.f32.mxu0 %v118_v58 }
 0x110   :  { %v761_v59 = vpop.eup %760  ;;  %727 = vmatprep.subr.bf16.mxu1 %v726_v9  ;;  %v307_v29 = vpop.permute.xlu1 %306  ;;  %v296_v52 = vadd.f32 %v294_v48, %v275_v46 }
 0x111   :  { %v119_v60 = vmul.f32 %v761_v59, %v1084_v2  ;;  %729 = vmatpush3.bf16.msra.mxu1 %v726_v9  ;;  %v449_v2 = vld [vmem:[#allocation8 + $0x40] sm:$0xff]  ;;  %vm309_vm12 = vcmp.eq.s32.totalorder %v307_v29, 1  ;;  %v367_v59 = vpop.permute.xlu0 %366 }
 0x112   :  { %v730_v11 = vpack.c.bf16 %v450_v10, %v449_v2  ;;  %v315_v54 = vsel %vm309_vm12, %v567_v51, 0.0  ;;  %vm371_vm3 = vcmp.eq.s32.totalorder %v367_v59, 1  ;;  %v571_v10 = vld [vmem:[#allocation10 + $0x8] ss:$0 sm:$0xff] }
 0x113   :  { %645 = vmatmul.mubr.f32.vlgmr.msra.gmra.mrb[0].mxu0 %v119_v60  ;;  %v317_v58 = vadd.f32 %v315_v54, %v296_v52  ;;  %v316_v60 = vadd.f32 %v314_v55, %v295_v53 }
 0x114   :  { %731 = vmatprep.subr.bf16.mxu1 %v730_v11  ;;  %v325_v30 = vpop.permute.xlu1 %324 }
 0x115   :  { %733 = vmatpush3.bf16.msra.mxu1 %v730_v11  ;;  %vm329_vm15 = vcmp.eq.s32.totalorder %v325_v30, 1  ;;  %v388_v1 = vpop.permute.xlu0 %387  ;;  %v377_v11 = vsel %vm371_vm3, %v570_v7, 0.0 }
 0x116   :  { %735 = vmatprep.subr.bf16.mxu1 %v734_v14  ;;  %v335_v62 = vsel %vm329_vm15, %v568_v56, 0.0  ;;  %vm392_vm5 = vcmp.eq.s32.totalorder %v388_v1, 1 }
 0x117   :  { %v337_v3 = vadd.f32 %v335_v62, %v316_v60  ;;  %v398_v18 = vsel %vm392_vm5, %v571_v10, 0.0 }
 0x118   :  { %v328_v32 = vpop.permute.xlu1 %327 }
 0x119   :  { %737 = vmatpush3.bf16.msra.mxu1 %v734_v14  ;;  %vm330_vm14 = vcmp.eq.s32.totalorder %v328_v32, 1  ;;  %v409_v14 = vpop.permute.xlu0 %408 }
 0x11a   :  { %739 = vmatprep.subr.bf16.mxu1 %v738_v17  ;;  %v336_v61 = vsel %vm330_vm14, %v568_v56, 0.0  ;;  %vm413_vm7 = vcmp.eq.s32.totalorder %v409_v14, 1 }
 0x11b   :  { %v338_v0 = vadd.f32 %v336_v61, %v317_v58 }
 0x11c   :  { %v346_v40 = vpop.permute.xlu1 %345 }
 0x11d   :  { %741 = vmatpush3.bf16.msra.mxu1 %v738_v17  ;;  %vm350_vm1 = vcmp.eq.s32.totalorder %v346_v40, 1  ;;  %v572_v17 = vld [vmem:[#allocation10 + $0x9] ss:$0 sm:$0xff] }
 0x11e   :  { %743 = vmatprep.subr.bf16.mxu1 %v742_v21  ;;  %v356_v6 = vsel %vm350_vm1, %v569_v63, 0.0  ;;  %v419_v22 = vsel %vm413_vm7, %v572_v17, 0.0 }
 0x11f   :  { %v358_v9 = vadd.f32 %v356_v6, %v337_v3 }
 0x120   :  { %v349_v49 = vpop.permute.xlu1 %348 }
 0x121   :  { %745 = vmatpush3.bf16.msra.mxu1 %v742_v21  ;;  %vm351_vm0 = vcmp.eq.s32.totalorder %v349_v49, 1  ;;  %v379_v16 = vadd.f32 %v377_v11, %v358_v9 }
 0x122   :  { %v357_v4 = vsel %vm351_vm0, %v569_v63, 0.0 }
 0x123   :  { %v359_v8 = vadd.f32 %v357_v4, %v338_v0  ;;  %v400_v21 = vadd.f32 %v398_v18, %v379_v16 }
 0x124   :  { %v370_v57 = vpop.permute.xlu1 %369 }
 0x125   :  { %vm372_vm2 = vcmp.eq.s32.totalorder %v370_v57, 1  ;;  %v421_v24 = vadd.f32 %v419_v22, %v400_v21 }
 0x126   :  { %v378_v2 = vsel %vm372_vm2, %v570_v7, 0.0 }
 0x127   :  { %v380_v13 = vadd.f32 %v378_v2, %v359_v8  ;;  %v423_v26 = vadd.f32 1.0, %v421_v24 }
 0x128   :  { %v391_v5 = vpop.permute.xlu1 %390 }
 0x129   :  { %vm393_vm4 = vcmp.eq.s32.totalorder %v391_v5, 1 }
 0x12a   :  { %v399_v15 = vsel %vm393_vm4, %v571_v10, 0.0 }
 0x12b   :  { %v401_v19 = vadd.f32 %v399_v15, %v380_v13 }
 0x12c   :  { %v412_v12 = vpop.permute.xlu1 %411 }
 0x12d   :  { %vm414_vm6 = vcmp.eq.s32.totalorder %v412_v12, 1 }
 0x12e   :  { %v420_v20 = vsel %vm414_vm6, %v572_v17, 0.0 }
 0x12f   :  { %v422_v23 = vadd.f32 %v420_v20, %v401_v19 }
 0x131   :  { %v424_v25 = vadd.f32 1.0, %v422_v23 }
 0x1e6   :  { %v646_v27 = vpop.f32.mrb[0].mxu0 }
 0x1e7   :  { %v426_v28 = vmul.f32 %v646_v27, %v424_v25  ;;  %v202_v29 = vpop.f32.mrb[1].mxu0 }
 0x1e8   :  { %v425_v30 = vmul.f32 %v423_v26, %v202_v29 }
 0x1e9   :  { %v574_v31 = vmul.f32 -1.442695, %v426_v28 }
 0x1ea   :  { %v573_v32 = vmul.f32 -1.442695, %v425_v30 }
 0x1eb   :  { %762 = vpow2.f32 %v574_v31 }
 0x1ec   :  { %764 = vpow2.f32 %v573_v32 }
 0x1f5   :  { %v763_v33 = vpop.eup %762 }
 0x1f6   :  { %v765_v34 = vpop.eup %764  ;;  %v434_v35 = vadd.f32 1.0, %v763_v33 }
 0x1f7   :  { %v433_v36 = vadd.f32 1.0, %v765_v34 }
 0x1f8   :  { %766 = vrcp.f32 %v434_v35 }
 0x1f9   :  { %768 = vrcp.f32 %v433_v36 }
 0x202   :  { %v767_v37 = vpop.eup %766 }
 0x203   :  { %v769_v38 = vpop.eup %768  ;;  %v440_v40 = vmul.f32 %v767_v37, %v426_v28 }
 0x204   :  { %v439_v39 = vmul.f32 %v769_v38, %v425_v30 }
 0x206   :  { %679 = vmatprep.mubr.f32.mxu1 %v439_v39 }
 0x207   :  { %680 = vmatmul.mubr.f32.vlgmr.msra.gmra.mrb[0].mxu1 %v440_v40 }
 0x2da   :  { %v681_v42 = vpop.f32.mrb[0].mxu1 }
 0x2db   :  { %v540_v43 = vmul.f32 %v681_v42, %v575_v41  ;;  %v523_v44 = vpop.f32.mrb[1].mxu1 }
 0x2dc   :  { %v539_v45 = vmul.f32 %v575_v41, %v523_v44 }
 0x2dd   :  { %542 = vst [vmem:[#allocation13 + $0x8] sm:$0xff] %v540_v43 }
 0x2de   :  { %541 = vst [vmem:[#allocation13] sm:$0xff] %v539_v45 }
 0x2df   :  { %913 = shalt.err (!%p910_p10)
}
 0x2e0   :  { %s914_s23 = scalar_lea.hbm %s1157_s6, 256 }
 0x2e1   :  { %p915_p11 = scmp.ne.s32.totalorder %s1157_s6, %s914_s23  ;;  %p918_p12 = scmp.lt.u32.totalorder %s914_s23, %s1157_s6 }
 0x2e3   :  { %p920_p13 = pnand %p918_p12, %p915_p11 }
 0x2e5   :  { %923 = shalt.err (!%p920_p13)
}
 0x2e6   :  { %554 = dma.vmem_to_hbm [thread:$0]  %s549_s0, 256, %s1157_s6, [#allocation4], %s936_s9, %s936_s9, %s937_s10  }
 0x2e7   :  { %932 = dma.done.wait [#allocation4], 256  }
 0x2e8   :  { %933 = vsyncadd [#allocation4], 4294967040 }
 0x2e9   :  { %558 = vsyncpa [#allocation3], 1 }
 0x2ea   :  { %559 = vsyncpa [#allocation6], 1 }
 0x2eb   :  { %560 = vsyncpa [#allocation9], 1 }
 0x2ec   :  { %561 = vsyncpa [#allocation12], 1 }
 0x2ed   :  { %562 = vsyncpa [#allocation4], 1 }

</bundles_post_ra>
